<compile_context>
chip_gen: v5e
topology: v5e:2x2
jax: 0.10.0
libtpu: 0.0.40
codegen_flags: <defaults>
</compile_context>

<pallas_src>
import jax
import jax.numpy as jnp
from jax.experimental import pallas as pl
from jax.experimental.pallas import tpu as pltpu


def _conv_matmul_kernel(w_ref, b_ref, p_ref, o_ref):
    # w_ref: (Cout, K) bf16, b_ref: (Cout, 1) f32,
    # p_ref: (K, TS) bf16 patches tile, o_ref: (Cout, TS) lane-dense output.
    acc = jnp.dot(w_ref[...], p_ref[...], preferred_element_type=jnp.float32)
    o_ref[...] = (acc + b_ref[...]).astype(o_ref.dtype)


def output_layer_forward(x_nchw, w_cat, b_cat, *, compute_dtype=jnp.bfloat16):
    """x_nchw: (N, Cin, H, W); w_cat: (Cout, Cin, 3, 3); b_cat: (Cout,)."""
    N, Cin, H, W = x_nchw.shape
    Cout = w_cat.shape[0]
    KH = KW = 3
    OH, OW = H - KH + 1, W - KW + 1
    K = Cin * KH * KW
    S = OH * OW

    # --- glue: im2col in (N, K, S) layout — a single fused HBM materialization.
    windows = [
        x_nchw[:, :, kh:kh + OH, kw:kw + OW]            # (N, Cin, OH, OW)
        for kh in range(KH) for kw in range(KW)
    ]
    patches = jnp.stack(windows, axis=2)                # (N, Cin, 9, OH, OW)
    patches = patches.reshape(N, K, S).astype(compute_dtype)

    # weight matrix with matching k ordering: k = ci*9 + kh*3 + kw.
    w_mat = w_cat.reshape(Cout, K).astype(compute_dtype)    # (Cout, K)
    b_mat = b_cat.reshape(Cout, 1).astype(jnp.float32)      # (Cout, 1)

    # Spatial tile: full extent when small, else 512 lanes (multiple of 128).
    TS = S if S <= 512 else 512
    grid = (N, pl.cdiv(S, TS))

    cost = pl.CostEstimate(
        flops=2 * N * S * K * Cout,
        transcendentals=0,
        bytes_accessed=int(patches.size * patches.dtype.itemsize
                           + w_mat.size * w_mat.dtype.itemsize
                           + b_mat.size * 4
                           + N * Cout * S * x_nchw.dtype.itemsize),
    )

    out_flat = pl.pallas_call(
        _conv_matmul_kernel,
        out_shape=jax.ShapeDtypeStruct((N, Cout, S), x_nchw.dtype),
        grid=grid,
        in_specs=[
            pl.BlockSpec((Cout, K), lambda n, s: (0, 0)),        # weights (resident)
            pl.BlockSpec((Cout, 1), lambda n, s: (0, 0)),        # bias (resident)
            pl.BlockSpec((None, K, TS), lambda n, s: (n, 0, s)),  # patches tile
        ],
        out_specs=pl.BlockSpec((None, Cout, TS), lambda n, s: (n, 0, s)),
        compiler_params=pltpu.CompilerParams(
            dimension_semantics=("parallel", "parallel")),
        cost_estimate=cost,
    )(w_mat, b_mat, patches)

    # channels are already outermost per batch -> free contiguous reshape.
    return out_flat.reshape(N, Cout, OH, OW)


def _reference_conv(x, w, b, compute_dtype=jnp.bfloat16):
    # Same bf16-rounded operands as the kernel, f32 accumulation.
    y = jax.lax.conv_general_dilated(
        x.astype(compute_dtype), w.astype(compute_dtype),
        window_strides=(1, 1), padding="VALID",
        dimension_numbers=("NCHW", "OIHW", "NCHW"),
        preferred_element_type=jnp.float32)
    return (y + b.reshape(1, -1, 1, 1)).astype(x.dtype)


if __name__ == "__main__":
    key = jax.random.PRNGKey(0)
    in_channels = 4
    number_of_classes = 3
    N, H, W = 2, 16, 16

    k_x, k_w1, k_b1, k_w2, k_b2 = jax.random.split(key, 5)
    x = jax.random.normal(k_x, (N, in_channels, H, W), dtype=jnp.float32)

    c1 = number_of_classes + 1      # output_conv1: num_classes + 1 channels
    c2 = 4                          # output_conv2: 4 channels
    w1 = jax.random.normal(k_w1, (c1, in_channels, 3, 3), jnp.float32) * 0.1
    b1 = jax.random.normal(k_b1, (c1,), jnp.float32) * 0.1
    w2 = jax.random.normal(k_w2, (c2, in_channels, 3, 3), jnp.float32) * 0.1
    b2 = jax.random.normal(k_b2, (c2,), jnp.float32) * 0.1

    # concat weights along Cout == torch.cat of the two conv outputs (dim=1).
    w_cat = jnp.concatenate([w1, w2], axis=0)
    b_cat = jnp.concatenate([b1, b2], axis=0)

    fwd = jax.jit(output_layer_forward)
    out = jax.block_until_ready(fwd(x, w_cat, b_cat))
    assert out.shape == (N, c1 + c2, H - 2, W - 2), out.shape

    ref = jnp.concatenate(
        [_reference_conv(x, w1, b1), _reference_conv(x, w2, b2)], axis=1)
    assert jnp.allclose(out, ref, atol=1e-4, rtol=1e-4), float(
        jnp.max(jnp.abs(out - ref)))

    print("KERNEL_OK")
</pallas_src>

<mosaic_0001>
module attributes {stable_mosaic.version = 11 : i64} {
  func.func @_conv_matmul_kernel(%arg0: i32, %arg1: i32, %arg2: memref<8x36xbf16, #tpu.memory_space<vmem>>, %arg3: memref<8x1xf32, #tpu.memory_space<vmem>>, %arg4: memref<1x36x196xbf16, #tpu.memory_space<vmem>>, %arg5: memref<1x8x196xf32, #tpu.memory_space<vmem>>) attributes {dimension_semantics = [#tpu.dimension_semantics<parallel>, #tpu.dimension_semantics<parallel>], iteration_bounds = array<i64: 2, 1>, scalar_prefetch = 0 : i64, scratch_operands = 0 : i64, tpu.core_type = #tpu.core_type<tc>, window_params = [{pipeline_mode = #tpu.pipeline_mode<synchronous>, transform_indices = @transform_0, window_bounds = array<i64: 8, 36>}, {pipeline_mode = #tpu.pipeline_mode<synchronous>, transform_indices = @transform_1, window_bounds = array<i64: 8, 1>}, {transform_indices = @transform_2, window_bounds = array<i64: 1, 36, 196>}, {transform_indices = @transform_3, window_bounds = array<i64: 1, 8, 196>}]} {
    %c0 = arith.constant 0 : index
    %c0_0 = arith.constant 0 : index
    %0 = vector.load %arg2[%c0, %c0_0] : memref<8x36xbf16, #tpu.memory_space<vmem>>, vector<8x36xbf16>
    %c0_1 = arith.constant 0 : index
    %c0_2 = arith.constant 0 : index
    %c0_3 = arith.constant 0 : index
    %1 = vector.load %arg4[%c0_1, %c0_2, %c0_3] : memref<1x36x196xbf16, #tpu.memory_space<vmem>>, vector<1x36x196xbf16>
    %2 = vector.shape_cast %1 : vector<1x36x196xbf16> to vector<36x196xbf16>
    %cst = arith.constant dense<0.000000e+00> : vector<8x196xf32>
    %3 = tpu.matmul %0, %2, %cst {dimension_numbers = #tpu.dot_dimension_numbers<[1], [0], [0], [1], [0, 0, 1, 1], [], []>} : vector<8x36xbf16>, vector<36x196xbf16>, vector<8x196xf32> -> vector<8x196xf32>
    %c0_4 = arith.constant 0 : index
    %c0_5 = arith.constant 0 : index
    %4 = vector.load %arg3[%c0_4, %c0_5] : memref<8x1xf32, #tpu.memory_space<vmem>>, vector<8x1xf32>
    %5 = vector.broadcast %4 : vector<8x1xf32> to vector<8x196xf32>
    %6 = arith.addf %3, %5 : vector<8x196xf32>
    %c0_6 = arith.constant 0 : index
    %c0_7 = arith.constant 0 : index
    %c0_8 = arith.constant 0 : index
    %7 = vector.load %arg5[%c0_6, %c0_7, %c0_8] : memref<1x8x196xf32, #tpu.memory_space<vmem>>, vector<1x8x196xf32>
    %8 = vector.shape_cast %7 : vector<1x8x196xf32> to vector<8x196xf32>
    %9 = vector.shape_cast %6 : vector<8x196xf32> to vector<1x8x196xf32>
    tpu.vector_store %arg5[%c0_6, %c0_7, %c0_8], %9 {strides = array<i32>} : memref<1x8x196xf32, #tpu.memory_space<vmem>>, vector<1x8x196xf32>,
    return
  }
  func.func @transform_0(%arg0: i32, %arg1: i32) -> (i32, i32) {
    %c0_i32 = arith.constant 0 : i32
    %c0_i32_0 = arith.constant 0 : i32
    %c0_i32_1 = arith.constant 0 : i32
    return %c0_i32, %c0_i32_0 : i32, i32
  }
  func.func @transform_1(%arg0: i32, %arg1: i32) -> (i32, i32) {
    %c0_i32 = arith.constant 0 : i32
    %c0_i32_0 = arith.constant 0 : i32
    %c0_i32_1 = arith.constant 0 : i32
    return %c0_i32, %c0_i32_0 : i32, i32
  }
  func.func @transform_2(%arg0: i32, %arg1: i32) -> (i32, i32, i32) {
    %c0_i32 = arith.constant 0 : i32
    %c0_i32_0 = arith.constant 0 : i32
    return %arg0, %c0_i32, %arg1 : i32, i32, i32
  }
  func.func @transform_3(%arg0: i32, %arg1: i32) -> (i32, i32, i32) {
    %c0_i32 = arith.constant 0 : i32
    %c0_i32_0 = arith.constant 0 : i32
    return %arg0, %c0_i32, %arg1 : i32, i32, i32
  }
}

</mosaic_0001>

<bundles_post_ra>
// kernel: output_layer_forward.1
= control target key start
LH: loop header
LB: loop body
LE: loop exit
PB: predicated region body
PF: predicated region fallthrough
CT: control target
= control target key end

     0   :  { %s480_s12 = smov 0   ;;  %s482_s13 = smov 0   ;;  %s523_s0 = inlined_call_operand.vmem [shape: bf16[8,36], index: 0, kind: input, shape index: {}]   ;;  %s524_s1 = inlined_call_operand.vmem [shape: f32[8,1], index: 1, kind: input, shape index: {}]   ;;  %s525_s2 = inlined_call_operand.vmem [shape: bf16[2,36,196], index: 2, kind: input, shape index: {}]   ;;  %s526_s3 = inlined_call_operand.vmem [shape: f32[2,8,196], index: 3, kind: output, shape index: {}]  }
   0x1   :  { %s484_s14 = smov 0  }
   0x2 LB: > { %s25_s15 = sadd.s32 1, %s453_s13  ;;  %p379_p0 = scmp.ge.s32.totalorder %s457_s14, 1  ;;  %s457_s14 = sphi %s484_s14, %s13_s14   ;;  %s453_s13 = sphi %s482_s13, %s528_s13   ;;  %s449_s12 = sphi %s480_s12, %s527_s12  }
   0x3   : > { %p27_p1 = scmp.ge.s32.totalorder %s25_s15, 2  ;;  %p158_p2 = scmp.lt.s32.totalorder %s457_s14, 3 }
   0x5   : > { %s530_s15 = smov (%p27_p1, %s25_s15), 0  ;;  %p159_p3 = pnand %p379_p0, %p158_p2 }
   0x6   : > { %p191_p4 = scmp.lt.s32.totalorder (!%p159_p3), %s449_s12, 1 }
   0x7   : > { %162 = sbr.rel (%p159_p3) target bundleno = 167 (0xa7), region = 32 }
   0xc   : > { %v459_v0 = vmov 0   ;;  %v217_v1 = vld [vmem:[%s524_s1] sm:$0xff]  ;;  %s532_s12 = smov (!%p191_p4, %s449_s12), 1  ;;  %vm252_vm0 = vcmask 1041408   ;;  %vm248_vm1 = vcmask 293888   ;;  %vm286_vm2 = vcmask 556032  }
   0xd   : > { %434 = vset.pattern.permute.xlu0 %v459_v0  ;;  %s408_s18 = smul.u32 40, %s532_s12  ;;  %v211_v21 = vld [vmem:[%s523_s0] sm:$0xf]  ;;  %s403_s24 = sshll.u32 %s532_s12, 4 }
   0xe   : > { %220 = vperm.xlu0 %434, %v217_v1   ;;  %s208_s27 = scalar_lea.vmem %s526_s3, %s403_s24 }
   0xf   : > { %s198_s21 = scalar_lea.vmem %s525_s2, %s408_s18 }
  0x10   : > { %v216_v2 = vld [vmem:[%s198_s21 + $0x20] sm:$0x33]  ;;  %v393_v5 = vld [vmem:[%s198_s21 + $0x10] sm:$0xf]  ;;  %v407_v8 = vld [vmem:[%s198_s21 + $0x14] sm:$0xf0] }
  0x11   : > { %v236_v3 = vunpack.c.l.b16 %v216_v2  ;;  %v237_v4 = vunpack.c.h.b16 %v216_v2  ;;  %v406_v9 = vld [vmem:[%s198_s21 + $0x14] sm:$0xf]  ;;  %v395_v10 = vld [vmem:[%s198_s21 + $0x18] sm:$0xf0]  ;;  %v394_v13 = vor.u32 %v407_v8, %v393_v5  ;;  %v385_v15 = vld [vmem:[%s198_s21] sm:$0xf] }
  0x12   : > { %v398_v14 = vor.u32 %v406_v9, %v395_v10  ;;  %v405_v16 = vld [vmem:[%s198_s21 + $0x4] sm:$0xf0]  ;;  %v404_v17 = vld [vmem:[%s198_s21 + $0x4] sm:$0xf]  ;;  %v387_v18 = vld [vmem:[%s198_s21 + $0x8] sm:$0xf0] }
  0x13   : > { %v242_v6 = vpack.c.b16 %v236_v3, %v236_v3  ;;  %v243_v7 = vpack.c.b16 %v237_v4, %v237_v4  ;;  %v386_v19 = vor.u32 %v405_v16, %v385_v15  ;;  %v390_v20 = vor.u32 %v404_v17, %v387_v18 }
  0x15   : > { %v254_v11 = vsel %vm252_vm0, %v242_v6, 0  ;;  %v257_v12 = vsel %vm252_vm0, %v243_v7, 0 }
  0x16   : > { %264 = vmatpush.bf16.msra.mxu0 %v254_v11  ;;  %277 = vmatpush.bf16.msra.mxu1 %v257_v12 }
  0x1a   : > { %265 = vmatpush.bf16.msra.mxu0 %v394_v13  ;;  %278 = vmatpush.bf16.msra.mxu1 %v398_v14 }
  0x1e   : > { %266 = vmatpush.bf16.msra.mxu0 %v386_v19  ;;  %279 = vmatpush.bf16.msra.mxu1 %v390_v20 }
  0x21   : > { %399 = vmatmul.msk.bf16.vlgmr.msra.gmra.mxu0 %vm248_vm1, %v211_v21  ;;  %400 = vmatmul.msk.bf16.vlgmr.msra.gmra.mxu1 %vm248_vm1, %v211_v21 }
  0x80   : > { %v221_v22 = vpop.permute.xlu0 %220 }
  0x9e   : > { %v268_v23 = vpop.f32.mrf.mxu0  ;;  %v281_v24 = vpop.f32.mrf.mxu1 }
  0x9f   : > { %v269_v25 = vadd.f32 %v268_v23, %v221_v22  ;;  %v282_v26 = vadd.f32 %v281_v24, %v221_v22 }
  0xa1   : > { %285 = vst [vmem:[%s208_s27] sm:$0xff] %v269_v25 }
  0xa2   : > { %287 = vst.msk [vmem:[%s208_s27 + $0x8] sm:$0xff] %vm286_vm2, %v282_v26 }
  0xa6   : > { %v270_v27 = vpop.f32.mrf.mxu0  ;;  %v283_v28 = vpop.f32.mrf.mxu1 }
  0xa7 PF: > { %s13_s14 = sadd.s32 1, %s457_s14   ;;  %s527_s12 = smov %s453_s13 }
  0xa8   : > { %p10_p5 = scmp.ge.s32.totalorder %s13_s14, 4   ;;  %s528_s13 = smov %s530_s15 }
  0xaa   :  { %12 = sbr.rel (!%p10_p5) target bundleno = 2 (0x2), region = 62 }

</bundles_post_ra>
